<compile_context>
chip_gen: v6e
topology: v6e:2x2x1
jax: 0.10.0
libtpu: 0.0.40
codegen_flags: <defaults>
</compile_context>

<pallas_src>
import functools

import jax
import jax.numpy as jnp
import numpy as np
from jax.experimental import pallas as pl
from jax.experimental.pallas import tpu as pltpu


def _round_up(x, m):
    return (x + m - 1) // m * m


def _conv_bn_prelu_kernel(x_ref, w_ref, p_ref, o_ref, plane_ref, *,
                          K, pad, H, W, Wp, span_pad, batch_tile):
    # x_ref:     (batch_tile, Cin, H*W)       unpadded image, spatial flat on lanes
    # w_ref:     (K*K, Cout, Cin)             per-tap conv weights, BN scale folded
    # p_ref:     (Cout, 2)                    [:,0]=BN shift, [:,1]=PReLU slope (f32)
    # o_ref:     (batch_tile, Cout, span_pad) lane-dense dense-conv output (f32)
    # plane_ref: (Cin, L) VMEM scratch        zero-padded flat image plane
    #
    # Zero the scratch every step (NOT only at program_id==0: with a "parallel"
    # grid each v7x TensorCore owns a private scratch and each must initialise
    # it).  Only the pad lanes rely on this zero; interior rows are overwritten
    # below for every image.
    plane_ref[...] = jnp.zeros_like(plane_ref)

    shift = p_ref[:, 0:1]          # (Cout, 1) f32, broadcast over lanes
    alpha = p_ref[:, 1:2]          # (Cout, 1) f32

    for b in range(batch_tile):
        xb = x_ref[b]              # (Cin, H*W): one aligned VMEM load per image

        # Scatter the H image rows into the padded plane at padded-row offsets.
        # H small (Cin, W) VMEM->VMEM copies replace the full padded-copy HBM
        # round trip the wrapper used to perform.
        for r in range(H):
            dst = (r + pad) * Wp + pad
            plane_ref[:, dst:dst + W] = xb[:, r * W:(r + 1) * W]

        # K*K accumulated MXU dots (no concat, no patch matrix).  Each tap is a
        # contiguous lane-window of the flat padded plane; columns past the valid
        # span read the zero tail of the scratch and are dropped by the wrapper.
        acc = None
        for kh in range(K):
            for kw in range(K):
                t = kh * K + kw
                off = kh * Wp + kw
                tap = plane_ref[:, off:off + span_pad]          # (Cin, span_pad)
                d = jnp.dot(w_ref[t], tap, preferred_element_type=jnp.float32)
                acc = d if acc is None else acc + d             # (Cout, span_pad)

        # BN shift + PReLU epilogue in f32; lane-dense store (span_pad % 128 == 0).
        y = acc + shift
        y = jnp.where(y > 0.0, y, alpha * y)
        o_ref[b] = y.astype(o_ref.dtype)


def conv_bn_prelu(x_nchw, weight_oihw, gamma, beta, running_mean, running_var,
                  alpha, *, stride=1, eps=1e-3, compute_dtype=jnp.float32,
                  batch_tile=1):
    N, Cin, H, W = x_nchw.shape
    Cout, Cin2, K, K2 = weight_oihw.shape
    assert Cin == Cin2 and K == K2
    assert N % batch_tile == 0, "batch_tile must divide N"

    pad = (K - 1) // 2
    Hp, Wp = H + 2 * pad, W + 2 * pad
    Hc, Wc = Hp - K + 1, Wp - K + 1            # dense (stride-1) conv output size
    Ho = (Hp - K) // stride + 1                # strided output size
    Wo = (Wp - K) // stride + 1

    span = Hc * Wp                             # valid flat dense-output length
    span_pad = _round_up(span, 128)            # lane-dense (unmasked) output rows
    # Scratch plane length: enough for every tap slice (max offset (K-1)*(Wp+1))
    # plus all padded image rows; zero tail absorbs the span padding.
    L = _round_up(max(span_pad + (K - 1) * (Wp + 1), Hp * Wp), 128)

    # Keep NCHW; no padding, no transposes in the wrapper.  Only wrapper-side data
    # movement is the (optional) cast to compute_dtype.
    x_flat = x_nchw.astype(compute_dtype).reshape(N, Cin, H * W)

    # Fold inference BatchNorm scale into per-tap conv weights (param prep, once).
    # Note: for bf16 compute the fold happens before the cast; numerics differ
    # slightly from scaling an f32 accumulator (covered by the bf16 tolerance).
    scale = gamma / jnp.sqrt(running_var + eps)                     # (Cout,)
    shift = beta - running_mean * scale
    w_taps = (jnp.transpose(weight_oihw, (2, 3, 0, 1))              # (K,K,Cout,Cin)
              .reshape(K * K, Cout, Cin) * scale[None, :, None])
    w_taps = w_taps.astype(compute_dtype)
    params = jnp.stack([shift, alpha], axis=1).astype(jnp.float32)  # (Cout, 2)

    itemsize = jnp.dtype(compute_dtype).itemsize
    vmem_need = (2 * (batch_tile * Cin * H * W * itemsize            # in, dbl-buf
                      + batch_tile * Cout * span_pad * 4)            # out, dbl-buf
                 + K * K * Cout * Cin * itemsize + Cout * 2 * 4      # weights/params
                 + Cin * L * itemsize)                               # scratch plane
    vmem_limit = int(min(max(2 * vmem_need, 8 * 1024 * 1024), 64 * 1024 * 1024))

    kernel = functools.partial(_conv_bn_prelu_kernel, K=K, pad=pad, H=H, W=W,
                               Wp=Wp, span_pad=span_pad, batch_tile=batch_tile)
    out_flat = pl.pallas_call(
        kernel,
        out_shape=jax.ShapeDtypeStruct((N, Cout, span_pad), jnp.float32),
        grid=(N // batch_tile,),
        in_specs=[
            pl.BlockSpec((batch_tile, Cin, H * W), lambda n: (n, 0, 0)),
            pl.BlockSpec((K * K, Cout, Cin), lambda n: (0, 0, 0)),
            pl.BlockSpec((Cout, 2), lambda n: (0, 0)),
        ],
        out_specs=pl.BlockSpec((batch_tile, Cout, span_pad), lambda n: (n, 0, 0)),
        scratch_shapes=[pltpu.VMEM((Cin, L), compute_dtype)],
        compiler_params=pltpu.CompilerParams(
            dimension_semantics=("parallel",),
            vmem_limit_bytes=vmem_limit),
    )(x_flat, w_taps, params)

    # One wrapper slice: drop the padded-width / padded-span columns AND apply the
    # stride (so stride>1 adds no extra HBM pass over the stride=1 path).
    out = out_flat[:, :, :span].reshape(N, Cout, Hc, Wp)
    out = out[:, :, ::stride, ::stride]
    return out[:, :, :Ho, :Wo]


if __name__ == "__main__":
    # Module hyper-params (small, consistent with the forward pass).
    N, nIn, nOut, H, W = 2, 4, 8, 16, 16
    kSize = 3

    key = jax.random.PRNGKey(0)
    k_x, k_w, k_g, k_b, k_m, k_v, k_a = jax.random.split(key, 7)

    x = jax.random.normal(k_x, (N, nIn, H, W), jnp.float32)
    weight = jax.random.normal(k_w, (nOut, nIn, kSize, kSize), jnp.float32) * 0.1
    gamma = 1.0 + 0.1 * jax.random.normal(k_g, (nOut,), jnp.float32)
    beta = 0.1 * jax.random.normal(k_b, (nOut,), jnp.float32)
    running_mean = 0.1 * jax.random.normal(k_m, (nOut,), jnp.float32)
    running_var = jnp.abs(1.0 + 0.1 * jax.random.normal(k_v, (nOut,), jnp.float32))
    alpha = 0.25 + 0.05 * jax.random.normal(k_a, (nOut,), jnp.float32)  # PReLU slope

    def reference(x_in, stride):
        pad = (kSize - 1) // 2
        ref = jax.lax.conv_general_dilated(
            x_in, weight, window_strides=(stride, stride),
            padding=((pad, pad), (pad, pad)),
            dimension_numbers=("NCHW", "OIHW", "NCHW"))
        scale = gamma / jnp.sqrt(running_var + 1e-3)
        shift = beta - running_mean * scale
        ref = ref * scale[None, :, None, None] + shift[None, :, None, None]
        return jnp.where(ref > 0, ref, alpha[None, :, None, None] * ref)

    # 1) stride=1, f32 operands.
    out = conv_bn_prelu(x, weight, gamma, beta, running_mean, running_var, alpha,
                        stride=1, eps=1e-3)
    out = jax.block_until_ready(out)
    assert out.shape == (N, nOut, H, W)
    np.testing.assert_allclose(np.asarray(out), np.asarray(reference(x, 1)),
                               rtol=1e-4, atol=1e-4)

    # 2) stride=2 (down-sampling): identical kernel; stride rides on the one
    #    wrapper slice that drops padded columns.
    out2 = conv_bn_prelu(x, weight, gamma, beta, running_mean, running_var, alpha,
                         stride=2, eps=1e-3)
    out2 = jax.block_until_ready(out2)
    assert out2.shape == (N, nOut, H // 2, W // 2)
    np.testing.assert_allclose(np.asarray(out2), np.asarray(reference(x, 2)),
                               rtol=1e-4, atol=1e-4)

    # 3) stride=1, bf16 operands (bf16 MXU on all generations, half the input DMA),
    #    f32 epilogue.
    out_bf16 = conv_bn_prelu(x, weight, gamma, beta, running_mean, running_var,
                             alpha, stride=1, eps=1e-3,
                             compute_dtype=jnp.bfloat16)
    out_bf16 = jax.block_until_ready(out_bf16)
    np.testing.assert_allclose(np.asarray(out_bf16), np.asarray(reference(x, 1)),
                               rtol=3e-2, atol=3e-2)

    # 4) batch_tile=2: two images per grid step (per-step overhead amortization).
    out_bt = conv_bn_prelu(x, weight, gamma, beta, running_mean, running_var,
                           alpha, stride=1, eps=1e-3, batch_tile=2)
    out_bt = jax.block_until_ready(out_bt)
    np.testing.assert_allclose(np.asarray(out_bt), np.asarray(reference(x, 1)),
                               rtol=1e-4, atol=1e-4)

    print("KERNEL_OK")
</pallas_src>

<mosaic_0001>
module attributes {stable_mosaic.version = 11 : i64} {
  func.func @_conv_bn_prelu_kernel(%arg0: i32, %arg1: memref<1x4x256xf32, #tpu.memory_space<vmem>>, %arg2: memref<9x8x4xf32, #tpu.memory_space<vmem>>, %arg3: memref<8x2xf32, #tpu.memory_space<vmem>>, %arg4: memref<1x8x384xf32, #tpu.memory_space<vmem>>, %arg5: memref<4x512xf32, #tpu.memory_space<vmem>>) attributes {dimension_semantics = [#tpu.dimension_semantics<parallel>], iteration_bounds = array<i64: 2>, scalar_prefetch = 0 : i64, scratch_operands = 1 : i64, tpu.core_type = #tpu.core_type<tc>, window_params = [{transform_indices = @transform_0, window_bounds = array<i64: 1, 4, 256>}, {pipeline_mode = #tpu.pipeline_mode<synchronous>, transform_indices = @transform_1, window_bounds = array<i64: 9, 8, 4>}, {pipeline_mode = #tpu.pipeline_mode<synchronous>, transform_indices = @transform_2, window_bounds = array<i64: 8, 2>}, {transform_indices = @transform_3, window_bounds = array<i64: 1, 8, 384>}]} {
    %cst = arith.constant 0.000000e+00 : f32
    %0 = vector.broadcast %cst : f32 to vector<4x512xf32>
    %c0 = arith.constant 0 : index
    %c0_0 = arith.constant 0 : index
    %1 = vector.load %arg5[%c0, %c0_0] : memref<4x512xf32, #tpu.memory_space<vmem>>, vector<4x512xf32>
    tpu.vector_store %arg5[%c0, %c0_0], %0 {strides = array<i32>} : memref<4x512xf32, #tpu.memory_space<vmem>>, vector<4x512xf32>,
    %c0_1 = arith.constant 0 : index
    %c0_2 = arith.constant 0 : index
    %2 = vector.load %arg3[%c0_1, %c0_2] : memref<8x2xf32, #tpu.memory_space<vmem>>, vector<8x1xf32>
    %c0_3 = arith.constant 0 : index
    %c1 = arith.constant 1 : index
    %3 = vector.load %arg3[%c0_3, %c1] : memref<8x2xf32, #tpu.memory_space<vmem>>, vector<8x1xf32>
    %c0_4 = arith.constant 0 : index
    %c0_5 = arith.constant 0 : index
    %c0_6 = arith.constant 0 : index
    %4 = vector.load %arg1[%c0_4, %c0_5, %c0_6] : memref<1x4x256xf32, #tpu.memory_space<vmem>>, vector<1x4x256xf32>
    %5 = vector.shape_cast %4 : vector<1x4x256xf32> to vector<4x256xf32>
    %6 = vector.extract_strided_slice %5 {offsets = [0, 0], sizes = [4, 16], strides = [1, 1]} : vector<4x256xf32> to vector<4x16xf32>
    %c0_7 = arith.constant 0 : index
    %c19 = arith.constant 19 : index
    %7 = vector.load %arg5[%c0_7, %c19] : memref<4x512xf32, #tpu.memory_space<vmem>>, vector<4x16xf32>
    tpu.vector_store %arg5[%c0_7, %c19], %6 {strides = array<i32>} : memref<4x512xf32, #tpu.memory_space<vmem>>, vector<4x16xf32>,
    %8 = vector.extract_strided_slice %5 {offsets = [0, 16], sizes = [4, 16], strides = [1, 1]} : vector<4x256xf32> to vector<4x16xf32>
    %c0_8 = arith.constant 0 : index
    %c37 = arith.constant 37 : index
    %9 = vector.load %arg5[%c0_8, %c37] : memref<4x512xf32, #tpu.memory_space<vmem>>, vector<4x16xf32>
    tpu.vector_store %arg5[%c0_8, %c37], %8 {strides = array<i32>} : memref<4x512xf32, #tpu.memory_space<vmem>>, vector<4x16xf32>,
    %10 = vector.extract_strided_slice %5 {offsets = [0, 32], sizes = [4, 16], strides = [1, 1]} : vector<4x256xf32> to vector<4x16xf32>
    %c0_9 = arith.constant 0 : index
    %c55 = arith.constant 55 : index
    %11 = vector.load %arg5[%c0_9, %c55] : memref<4x512xf32, #tpu.memory_space<vmem>>, vector<4x16xf32>
    tpu.vector_store %arg5[%c0_9, %c55], %10 {strides = array<i32>} : memref<4x512xf32, #tpu.memory_space<vmem>>, vector<4x16xf32>,
    %12 = vector.extract_strided_slice %5 {offsets = [0, 48], sizes = [4, 16], strides = [1, 1]} : vector<4x256xf32> to vector<4x16xf32>
    %c0_10 = arith.constant 0 : index
    %c73 = arith.constant 73 : index
    %13 = vector.load %arg5[%c0_10, %c73] : memref<4x512xf32, #tpu.memory_space<vmem>>, vector<4x16xf32>
    tpu.vector_store %arg5[%c0_10, %c73], %12 {strides = array<i32>} : memref<4x512xf32, #tpu.memory_space<vmem>>, vector<4x16xf32>,
    %14 = vector.extract_strided_slice %5 {offsets = [0, 64], sizes = [4, 16], strides = [1, 1]} : vector<4x256xf32> to vector<4x16xf32>
    %c0_11 = arith.constant 0 : index
    %c91 = arith.constant 91 : index
    %15 = vector.load %arg5[%c0_11, %c91] : memref<4x512xf32, #tpu.memory_space<vmem>>, vector<4x16xf32>
    tpu.vector_store %arg5[%c0_11, %c91], %14 {strides = array<i32>} : memref<4x512xf32, #tpu.memory_space<vmem>>, vector<4x16xf32>,
    %16 = vector.extract_strided_slice %5 {offsets = [0, 80], sizes = [4, 16], strides = [1, 1]} : vector<4x256xf32> to vector<4x16xf32>
    %c0_12 = arith.constant 0 : index
    %c109 = arith.constant 109 : index
    %17 = vector.load %arg5[%c0_12, %c109] : memref<4x512xf32, #tpu.memory_space<vmem>>, vector<4x16xf32>
    tpu.vector_store %arg5[%c0_12, %c109], %16 {strides = array<i32>} : memref<4x512xf32, #tpu.memory_space<vmem>>, vector<4x16xf32>,
    %18 = vector.extract_strided_slice %5 {offsets = [0, 96], sizes = [4, 16], strides = [1, 1]} : vector<4x256xf32> to vector<4x16xf32>
    %c0_13 = arith.constant 0 : index
    %c127 = arith.constant 127 : index
    %19 = vector.load %arg5[%c0_13, %c127] : memref<4x512xf32, #tpu.memory_space<vmem>>, vector<4x16xf32>
    tpu.vector_store %arg5[%c0_13, %c127], %18 {strides = array<i32>} : memref<4x512xf32, #tpu.memory_space<vmem>>, vector<4x16xf32>,
    %20 = vector.extract_strided_slice %5 {offsets = [0, 112], sizes = [4, 16], strides = [1, 1]} : vector<4x256xf32> to vector<4x16xf32>
    %c0_14 = arith.constant 0 : index
    %c145 = arith.constant 145 : index
    %21 = vector.load %arg5[%c0_14, %c145] : memref<4x512xf32, #tpu.memory_space<vmem>>, vector<4x16xf32>
    tpu.vector_store %arg5[%c0_14, %c145], %20 {strides = array<i32>} : memref<4x512xf32, #tpu.memory_space<vmem>>, vector<4x16xf32>,
    %22 = vector.extract_strided_slice %5 {offsets = [0, 128], sizes = [4, 16], strides = [1, 1]} : vector<4x256xf32> to vector<4x16xf32>
    %c0_15 = arith.constant 0 : index
    %c163 = arith.constant 163 : index
    %23 = vector.load %arg5[%c0_15, %c163] : memref<4x512xf32, #tpu.memory_space<vmem>>, vector<4x16xf32>
    tpu.vector_store %arg5[%c0_15, %c163], %22 {strides = array<i32>} : memref<4x512xf32, #tpu.memory_space<vmem>>, vector<4x16xf32>,
    %24 = vector.extract_strided_slice %5 {offsets = [0, 144], sizes = [4, 16], strides = [1, 1]} : vector<4x256xf32> to vector<4x16xf32>
    %c0_16 = arith.constant 0 : index
    %c181 = arith.constant 181 : index
    %25 = vector.load %arg5[%c0_16, %c181] : memref<4x512xf32, #tpu.memory_space<vmem>>, vector<4x16xf32>
    tpu.vector_store %arg5[%c0_16, %c181], %24 {strides = array<i32>} : memref<4x512xf32, #tpu.memory_space<vmem>>, vector<4x16xf32>,
    %26 = vector.extract_strided_slice %5 {offsets = [0, 160], sizes = [4, 16], strides = [1, 1]} : vector<4x256xf32> to vector<4x16xf32>
    %c0_17 = arith.constant 0 : index
    %c199 = arith.constant 199 : index
    %27 = vector.load %arg5[%c0_17, %c199] : memref<4x512xf32, #tpu.memory_space<vmem>>, vector<4x16xf32>
    tpu.vector_store %arg5[%c0_17, %c199], %26 {strides = array<i32>} : memref<4x512xf32, #tpu.memory_space<vmem>>, vector<4x16xf32>,
    %28 = vector.extract_strided_slice %5 {offsets = [0, 176], sizes = [4, 16], strides = [1, 1]} : vector<4x256xf32> to vector<4x16xf32>
    %c0_18 = arith.constant 0 : index
    %c217 = arith.constant 217 : index
    %29 = vector.load %arg5[%c0_18, %c217] : memref<4x512xf32, #tpu.memory_space<vmem>>, vector<4x16xf32>
    tpu.vector_store %arg5[%c0_18, %c217], %28 {strides = array<i32>} : memref<4x512xf32, #tpu.memory_space<vmem>>, vector<4x16xf32>,
    %30 = vector.extract_strided_slice %5 {offsets = [0, 192], sizes = [4, 16], strides = [1, 1]} : vector<4x256xf32> to vector<4x16xf32>
    %c0_19 = arith.constant 0 : index
    %c235 = arith.constant 235 : index
    %31 = vector.load %arg5[%c0_19, %c235] : memref<4x512xf32, #tpu.memory_space<vmem>>, vector<4x16xf32>
    tpu.vector_store %arg5[%c0_19, %c235], %30 {strides = array<i32>} : memref<4x512xf32, #tpu.memory_space<vmem>>, vector<4x16xf32>,
    %32 = vector.extract_strided_slice %5 {offsets = [0, 208], sizes = [4, 16], strides = [1, 1]} : vector<4x256xf32> to vector<4x16xf32>
    %c0_20 = arith.constant 0 : index
    %c253 = arith.constant 253 : index
    %33 = vector.load %arg5[%c0_20, %c253] : memref<4x512xf32, #tpu.memory_space<vmem>>, vector<4x16xf32>
    tpu.vector_store %arg5[%c0_20, %c253], %32 {strides = array<i32>} : memref<4x512xf32, #tpu.memory_space<vmem>>, vector<4x16xf32>,
    %34 = vector.extract_strided_slice %5 {offsets = [0, 224], sizes = [4, 16], strides = [1, 1]} : vector<4x256xf32> to vector<4x16xf32>
    %c0_21 = arith.constant 0 : index
    %c271 = arith.constant 271 : index
    %35 = vector.load %arg5[%c0_21, %c271] : memref<4x512xf32, #tpu.memory_space<vmem>>, vector<4x16xf32>
    tpu.vector_store %arg5[%c0_21, %c271], %34 {strides = array<i32>} : memref<4x512xf32, #tpu.memory_space<vmem>>, vector<4x16xf32>,
    %36 = vector.extract_strided_slice %5 {offsets = [0, 240], sizes = [4, 16], strides = [1, 1]} : vector<4x256xf32> to vector<4x16xf32>
    %c0_22 = arith.constant 0 : index
    %c289 = arith.constant 289 : index
    %37 = vector.load %arg5[%c0_22, %c289] : memref<4x512xf32, #tpu.memory_space<vmem>>, vector<4x16xf32>
    tpu.vector_store %arg5[%c0_22, %c289], %36 {strides = array<i32>} : memref<4x512xf32, #tpu.memory_space<vmem>>, vector<4x16xf32>,
    %c0_23 = arith.constant 0 : index
    %c0_24 = arith.constant 0 : index
    %38 = vector.load %arg5[%c0_23, %c0_24] : memref<4x512xf32, #tpu.memory_space<vmem>>, vector<4x384xf32>
    %c0_25 = arith.constant 0 : index
    %c0_26 = arith.constant 0 : index
    %c0_27 = arith.constant 0 : index
    %39 = vector.load %arg2[%c0_25, %c0_26, %c0_27] : memref<9x8x4xf32, #tpu.memory_space<vmem>>, vector<1x8x4xf32>
    %40 = vector.shape_cast %39 : vector<1x8x4xf32> to vector<8x4xf32>
    %cst_28 = arith.constant dense<0.000000e+00> : vector<8x384xf32>
    %41 = tpu.matmul %40, %38, %cst_28 {dimension_numbers = #tpu.dot_dimension_numbers<[1], [0], [0], [1], [0, 0, 1, 1], [], []>} : vector<8x4xf32>, vector<4x384xf32>, vector<8x384xf32> -> vector<8x384xf32>
    %c0_29 = arith.constant 0 : index
    %c1_30 = arith.constant 1 : index
    %42 = vector.load %arg5[%c0_29, %c1_30] : memref<4x512xf32, #tpu.memory_space<vmem>>, vector<4x384xf32>
    %c1_31 = arith.constant 1 : index
    %c0_32 = arith.constant 0 : index
    %c0_33 = arith.constant 0 : index
    %43 = vector.load %arg2[%c1_31, %c0_32, %c0_33] : memref<9x8x4xf32, #tpu.memory_space<vmem>>, vector<1x8x4xf32>
    %44 = vector.shape_cast %43 : vector<1x8x4xf32> to vector<8x4xf32>
    %cst_34 = arith.constant dense<0.000000e+00> : vector<8x384xf32>
    %45 = tpu.matmul %44, %42, %cst_34 {dimension_numbers = #tpu.dot_dimension_numbers<[1], [0], [0], [1], [0, 0, 1, 1], [], []>} : vector<8x4xf32>, vector<4x384xf32>, vector<8x384xf32> -> vector<8x384xf32>
    %46 = arith.addf %41, %45 : vector<8x384xf32>
    %c0_35 = arith.constant 0 : index
    %c2 = arith.constant 2 : index
    %47 = vector.load %arg5[%c0_35, %c2] : memref<4x512xf32, #tpu.memory_space<vmem>>, vector<4x384xf32>
    %c2_36 = arith.constant 2 : index
    %c0_37 = arith.constant 0 : index
    %c0_38 = arith.constant 0 : index
    %48 = vector.load %arg2[%c2_36, %c0_37, %c0_38] : memref<9x8x4xf32, #tpu.memory_space<vmem>>, vector<1x8x4xf32>
    %49 = vector.shape_cast %48 : vector<1x8x4xf32> to vector<8x4xf32>
    %cst_39 = arith.constant dense<0.000000e+00> : vector<8x384xf32>
    %50 = tpu.matmul %49, %47, %cst_39 {dimension_numbers = #tpu.dot_dimension_numbers<[1], [0], [0], [1], [0, 0, 1, 1], [], []>} : vector<8x4xf32>, vector<4x384xf32>, vector<8x384xf32> -> vector<8x384xf32>
    %51 = arith.addf %46, %50 : vector<8x384xf32>
    %c0_40 = arith.constant 0 : index
    %c18 = arith.constant 18 : index
    %52 = vector.load %arg5[%c0_40, %c18] : memref<4x512xf32, #tpu.memory_space<vmem>>, vector<4x384xf32>
    %c3 = arith.constant 3 : index
    %c0_41 = arith.constant 0 : index
    %c0_42 = arith.constant 0 : index
    %53 = vector.load %arg2[%c3, %c0_41, %c0_42] : memref<9x8x4xf32, #tpu.memory_space<vmem>>, vector<1x8x4xf32>
    %54 = vector.shape_cast %53 : vector<1x8x4xf32> to vector<8x4xf32>
    %cst_43 = arith.constant dense<0.000000e+00> : vector<8x384xf32>
    %55 = tpu.matmul %54, %52, %cst_43 {dimension_numbers = #tpu.dot_dimension_numbers<[1], [0], [0], [1], [0, 0, 1, 1], [], []>} : vector<8x4xf32>, vector<4x384xf32>, vector<8x384xf32> -> vector<8x384xf32>
    %56 = arith.addf %51, %55 : vector<8x384xf32>
    %c0_44 = arith.constant 0 : index
    %c19_45 = arith.constant 19 : index
    %57 = vector.load %arg5[%c0_44, %c19_45] : memref<4x512xf32, #tpu.memory_space<vmem>>, vector<4x384xf32>
    %c4 = arith.constant 4 : index
    %c0_46 = arith.constant 0 : index
    %c0_47 = arith.constant 0 : index
    %58 = vector.load %arg2[%c4, %c0_46, %c0_47] : memref<9x8x4xf32, #tpu.memory_space<vmem>>, vector<1x8x4xf32>
    %59 = vector.shape_cast %58 : vector<1x8x4xf32> to vector<8x4xf32>
    %cst_48 = arith.constant dense<0.000000e+00> : vector<8x384xf32>
    %60 = tpu.matmul %59, %57, %cst_48 {dimension_numbers = #tpu.dot_dimension_numbers<[1], [0], [0], [1], [0, 0, 1, 1], [], []>} : vector<8x4xf32>, vector<4x384xf32>, vector<8x384xf32> -> vector<8x384xf32>
    %61 = arith.addf %56, %60 : vector<8x384xf32>
    %c0_49 = arith.constant 0 : index
    %c20 = arith.constant 20 : index
    %62 = vector.load %arg5[%c0_49, %c20] : memref<4x512xf32, #tpu.memory_space<vmem>>, vector<4x384xf32>
    %c5 = arith.constant 5 : index
    %c0_50 = arith.constant 0 : index
    %c0_51 = arith.constant 0 : index
    %63 = vector.load %arg2[%c5, %c0_50, %c0_51] : memref<9x8x4xf32, #tpu.memory_space<vmem>>, vector<1x8x4xf32>
    %64 = vector.shape_cast %63 : vector<1x8x4xf32> to vector<8x4xf32>
    %cst_52 = arith.constant dense<0.000000e+00> : vector<8x384xf32>
    %65 = tpu.matmul %64, %62, %cst_52 {dimension_numbers = #tpu.dot_dimension_numbers<[1], [0], [0], [1], [0, 0, 1, 1], [], []>} : vector<8x4xf32>, vector<4x384xf32>, vector<8x384xf32> -> vector<8x384xf32>
    %66 = arith.addf %61, %65 : vector<8x384xf32>
    %c0_53 = arith.constant 0 : index
    %c36 = arith.constant 36 : index
    %67 = vector.load %arg5[%c0_53, %c36] : memref<4x512xf32, #tpu.memory_space<vmem>>, vector<4x384xf32>
    %c6 = arith.constant 6 : index
    %c0_54 = arith.constant 0 : index
    %c0_55 = arith.constant 0 : index
    %68 = vector.load %arg2[%c6, %c0_54, %c0_55] : memref<9x8x4xf32, #tpu.memory_space<vmem>>, vector<1x8x4xf32>
    %69 = vector.shape_cast %68 : vector<1x8x4xf32> to vector<8x4xf32>
    %cst_56 = arith.constant dense<0.000000e+00> : vector<8x384xf32>
    %70 = tpu.matmul %69, %67, %cst_56 {dimension_numbers = #tpu.dot_dimension_numbers<[1], [0], [0], [1], [0, 0, 1, 1], [], []>} : vector<8x4xf32>, vector<4x384xf32>, vector<8x384xf32> -> vector<8x384xf32>
    %71 = arith.addf %66, %70 : vector<8x384xf32>
    %c0_57 = arith.constant 0 : index
    %c37_58 = arith.constant 37 : index
    %72 = vector.load %arg5[%c0_57, %c37_58] : memref<4x512xf32, #tpu.memory_space<vmem>>, vector<4x384xf32>
    %c7 = arith.constant 7 : index
    %c0_59 = arith.constant 0 : index
    %c0_60 = arith.constant 0 : index
    %73 = vector.load %arg2[%c7, %c0_59, %c0_60] : memref<9x8x4xf32, #tpu.memory_space<vmem>>, vector<1x8x4xf32>
    %74 = vector.shape_cast %73 : vector<1x8x4xf32> to vector<8x4xf32>
    %cst_61 = arith.constant dense<0.000000e+00> : vector<8x384xf32>
    %75 = tpu.matmul %74, %72, %cst_61 {dimension_numbers = #tpu.dot_dimension_numbers<[1], [0], [0], [1], [0, 0, 1, 1], [], []>} : vector<8x4xf32>, vector<4x384xf32>, vector<8x384xf32> -> vector<8x384xf32>
    %76 = arith.addf %71, %75 : vector<8x384xf32>
    %c0_62 = arith.constant 0 : index
    %c38 = arith.constant 38 : index
    %77 = vector.load %arg5[%c0_62, %c38] : memref<4x512xf32, #tpu.memory_space<vmem>>, vector<4x384xf32>
    %c8 = arith.constant 8 : index
    %c0_63 = arith.constant 0 : index
    %c0_64 = arith.constant 0 : index
    %78 = vector.load %arg2[%c8, %c0_63, %c0_64] : memref<9x8x4xf32, #tpu.memory_space<vmem>>, vector<1x8x4xf32>
    %79 = vector.shape_cast %78 : vector<1x8x4xf32> to vector<8x4xf32>
    %cst_65 = arith.constant dense<0.000000e+00> : vector<8x384xf32>
    %80 = tpu.matmul %79, %77, %cst_65 {dimension_numbers = #tpu.dot_dimension_numbers<[1], [0], [0], [1], [0, 0, 1, 1], [], []>} : vector<8x4xf32>, vector<4x384xf32>, vector<8x384xf32> -> vector<8x384xf32>
    %81 = arith.addf %76, %80 : vector<8x384xf32>
    %82 = vector.broadcast %2 : vector<8x1xf32> to vector<8x384xf32>
    %83 = arith.addf %81, %82 : vector<8x384xf32>
    %cst_66 = arith.constant 0.000000e+00 : f32
    %84 = vector.broadcast %cst_66 : f32 to vector<8x384xf32>
    %85 = arith.cmpf ogt, %83, %84 : vector<8x384xf32>
    %86 = vector.broadcast %3 : vector<8x1xf32> to vector<8x384xf32>
    %87 = arith.mulf %86, %83 : vector<8x384xf32>
    %88 = arith.select %85, %83, %87 : vector<8x384xi1>, vector<8x384xf32>
    %c0_67 = arith.constant 0 : index
    %c0_68 = arith.constant 0 : index
    %c0_69 = arith.constant 0 : index
    %89 = vector.load %arg4[%c0_67, %c0_68, %c0_69] : memref<1x8x384xf32, #tpu.memory_space<vmem>>, vector<1x8x384xf32>
    %90 = vector.shape_cast %89 : vector<1x8x384xf32> to vector<8x384xf32>
    %91 = vector.shape_cast %88 : vector<8x384xf32> to vector<1x8x384xf32>
    tpu.vector_store %arg4[%c0_67, %c0_68, %c0_69], %91 {strides = array<i32>} : memref<1x8x384xf32, #tpu.memory_space<vmem>>, vector<1x8x384xf32>,
    return
  }
  func.func @transform_0(%arg0: i32) -> (i32, i32, i32) {
    %c0_i32 = arith.constant 0 : i32
    %c0_i32_0 = arith.constant 0 : i32
    %c0_i32_1 = arith.constant 0 : i32
    return %arg0, %c0_i32, %c0_i32_0 : i32, i32, i32
  }
  func.func @transform_1(%arg0: i32) -> (i32, i32, i32) {
    %c0_i32 = arith.constant 0 : i32
    %c0_i32_0 = arith.constant 0 : i32
    %c0_i32_1 = arith.constant 0 : i32
    %c0_i32_2 = arith.constant 0 : i32
    return %c0_i32, %c0_i32_0, %c0_i32_1 : i32, i32, i32
  }
  func.func @transform_2(%arg0: i32) -> (i32, i32) {
    %c0_i32 = arith.constant 0 : i32
    %c0_i32_0 = arith.constant 0 : i32
    %c0_i32_1 = arith.constant 0 : i32
    return %c0_i32, %c0_i32_0 : i32, i32
  }
  func.func @transform_3(%arg0: i32) -> (i32, i32, i32) {
    %c0_i32 = arith.constant 0 : i32
    %c0_i32_0 = arith.constant 0 : i32
    %c0_i32_1 = arith.constant 0 : i32
    return %arg0, %c0_i32, %c0_i32_0 : i32, i32, i32
  }
}

</mosaic_0001>

<bundles_post_ra>
// kernel: tpu_custom_call.1
= control target key start
LH: loop header
LB: loop body
LE: loop exit
PB: predicated region body
PF: predicated region fallthrough
CT: control target
= control target key end

     0   :  { %8 = vsyncpa [#allocation4], 0  ;;  %s2515_s0 = inlined_call_operand.vmem [shape: f32[2,4,256], index: 0, kind: input, shape index: {}]   ;;  %s2516_s1 = inlined_call_operand.vmem [shape: f32[9,8,4], index: 1, kind: input, shape index: {}]   ;;  %s2517_s2 = inlined_call_operand.vmem [shape: f32[8,2], index: 2, kind: input, shape index: {}]   ;;  %s2518_s3 = inlined_call_operand.hbm [shape: f32[2,8,384], index: 3, kind: output, shape index: {}]  }
   0x1   :  { %10 = vsyncpa [#allocation4 + $0x1], 0  ;;  %s2229_s12 = smov 0   ;;  %s2231_s13 = smov 0  }
   0x2   :  { %s2233_s14 = smov 0   ;;  %s2235_s15 = smov 0  }
   0x3 LB: > { %s2250_s16 = sadd.s32 4294967295, %s2178_s15   ;;  %s1918_s17 = sadd.s32 4294967294, %s2178_s15   ;;  %s2178_s15 = sphi %s2235_s15, %s2524_s15   ;;  %s2174_s14 = sphi %s2233_s14, %s2523_s14   ;;  %s2170_s13 = sphi %s2231_s13, %s2522_s13   ;;  %s2166_s12 = sphi %s2229_s12, %s2521_s12  }
   0x4   : > { %s2254_s18 = sadd.s32 1, %s2178_s15   ;;  %s91_s19 = sadd.s32 1, %s2174_s14 }
   0x5   : > { %s88_s20 = ssub.s32 %s2178_s15, %s2254_s18  ;;  %p101_p0 = scmp.ne.s32.totalorder %s2174_s14, %s2170_s13 }
   0x6   : > { %p89_p1 = scmp.eq.s32.totalorder %s88_s20, 0  ;;  %p102_p2 = scmp.eq.s32.totalorder %s2250_s16, 1 }
   0x7   : > { %p107_p3 = scmp.ne.s32.totalorder %s2170_s13, %s2166_s12  ;;  %p108_p4 = scmp.eq.s32.totalorder %s1918_s17, 1 }
   0x8   : > { %s2265_s21 = scalar_select %p89_p1, %s2174_s14, %s91_s19  }
   0x9   : > { %p2267_p5 = por %p102_p2, %p101_p0  ;;  %p2271_p6 = por %p108_p4, %p107_p3 }
   0xa   : > { %p1921_p7 = scmp.ge.s32.totalorder %s2178_s15, 1  ;;  %p140_p8 = scmp.lt.s32.totalorder %s2178_s15, 3 }
   0xc   : > { %p141_p9 = pnand %p1921_p7, %p140_p8 }
   0xd   : > { %p164_p10 = scmp.lt.s32.totalorder (!%p141_p9), %s2250_s16, 1  ;;  %s2181_s29 = smov (!%p141_p9), 23  }
   0xe   : > { %144 = sbr.rel (%p141_p9) target bundleno = 568 (0x238), region = 32  ;;  %s2182_s30 = smov (!%p141_p9), 19  }
   0xf   : > { %s2183_s4 = smov (!%p141_p9), 25   ;;  %s2184_s5 = smov (!%p141_p9), 21  }
  0x10   : > { %s2185_s6 = smov (!%p141_p9), 27   ;;  %s2186_s7 = smov (!%p141_p9), 31  }
  0x11   : > { %s2187_s8 = smov (!%p141_p9), 35   ;;  %s2188_s9 = smov (!%p141_p9), 29  }
  0x12   : > { %s2189_s10 = smov (!%p141_p9), 33   ;;  %s2190_s11 = smov (!%p141_p9), 37  }
  0x13   : > { %v2180_v0 = vmov 0.0   ;;  %s165_s24 = scalar_select %p164_p10, %s2250_s16, 1  ;;  %vm177_vm0 = vcmask 281752   ;;  %vm182_vm1 = vcmask 429352   ;;  %vm187_vm2 = vcmask 576952   ;;  %v171_v40 = vld [vmem:[%s2517_s2] sm:$0xff] }
  0x14   : > { %169 = vst [vmem:[#allocation2] sm:$0xff] %v2180_v0  ;;  %170 = vst [vmem:[#allocation2 + $0x8] sm:$0xff] %v2180_v0  ;;  %379 = vmatprep.mubr.f32.mxu0 %v2180_v0  ;;  %1999 = vmatprep.subr.mxu1 %v2180_v0  ;;  %s2191_s17 = smov 41   ;;  %s2192_s19 = smov 39   ;;  %vm192_vm3 = vcmask 724552   ;;  %vm197_vm4 = vcmask 872152  }
  0x15   : > { %s1980_s25 = sshll.u32 %s165_s24, 3  ;;  %s2193_s20 = smov 45   ;;  %vm210_vm5 = vcmask 1044472   ;;  %vm211_vm6 = vcmask 121860   ;;  %vm207_vm7 = vcmask 252928   ;;  %vm202_vm8 = vcmask 1019752  }
  0x16   : > { %s168_s28 = scalar_lea.vmem %s2515_s0, %s1980_s25  ;;  %s2194_s24 = smov 43   ;;  %vm212_vm9 = vmor %vm211_vm6, %vm210_vm5  ;;  %vm222_vm10 = vcmask 285696   ;;  %vm217_vm11 = vcmask 265352   ;;  %vm225_vm12 = vcmask 412952   ;;  %vm230_vm13 = vcmask 302080   ;;  %v1924_v56 = vld [vmem:[%s2516_s1 + $0x8] sm:$0xff] }
  0x17   : > { %v172_v1 = vld [vmem:[%s168_s28] sm:$0xff]  ;;  %s2195_s25 = smov 47   ;;  %s2196_s26 = smov 49   ;;  %vm233_vm14 = vcmask 560552   ;;  %vm246_vm15 = vcmask 334848   ;;  %vm262_vm5 = vcmask 367616  }
  0x18   : > { %184 = vrot.lane.b32.xlu1 %v172_v1, %s2181_s29  ;;  %174 = vrot.lane.b32.xlu0 %v172_v1, %s2182_s30  ;;  %vm254_vm6 = vcmask 351232   ;;  %s2197_s27 = smov 127   ;;  %s2198_s28 = smov 126   ;;  %v2206_v38 = vmov 0   ;;  %v2207_v39 = vmov 1   ;;  %v283_v59 = vld [vmem:[%s2516_s1] sm:$0xff] }
  0x19   : > { %s2199_s29 = smov 110   ;;  %s2200_s30 = smov 109   ;;  %2113 = vset.pattern.permute.xlu0 %v2206_v38  ;;  %2114 = vset.pattern.permute.xlu1 %v2207_v39 }
  0x1c   : > { %189 = vrot.lane.b32.xlu1 %v172_v1, %s2183_s4  ;;  %179 = vrot.lane.b32.xlu0 %v172_v1, %s2184_s5  ;;  %s2201_s4 = smov 108   ;;  %s2203_s5 = smov 92  }
  0x20   : > { %194 = vrot.lane.b32.xlu1 %v172_v1, %s2185_s6  ;;  %204 = vrot.lane.b32.xlu0 %v172_v1, %s2186_s7  ;;  %s2204_s6 = smov 91   ;;  %s2205_s7 = smov 90  }
  0x24   : > { %219 = vrot.lane.b32.xlu1 %v172_v1, %s2187_s8  ;;  %199 = vrot.lane.b32.xlu0 %v172_v1, %s2188_s9 }
  0x28   : > { %214 = vrot.lane.b32.xlu1 %v172_v1, %s2189_s10  ;;  %227 = vrot.lane.b32.xlu0 %v172_v1, %s2190_s11  ;;  %s161_s10 = sand.u32 1, %s2170_s13  }
  0x29   : > { %s2044_s11 = smul.u32 24, %s161_s10 }
  0x2c   : > { %243 = vrot.lane.b32.xlu1 %v172_v1, %s2191_s17  ;;  %235 = vrot.lane.b32.xlu0 %v172_v1, %s2192_s19  ;;  %s2045_s17 = smul.u32 384, %s2250_s16  ;;  %s163_s19 = scalar_lea.vmem [#allocation3], %s2044_s11 }
  0x2d   : > { %s1845_s16 = scalar_lea.sflag [#allocation4], %s161_s10 }
  0x30   : > { %259 = vrot.lane.b32.xlu1 %v172_v1, %s2193_s20  ;;  %251 = vrot.lane.b32.xlu0 %v172_v1, %s2194_s24  ;;  %s1859_s20 = sshll.u32 %s163_s19, 4  ;;  %s2474_s20 = int_to_ptr.vmem [resolvable:$true] %s1859_s20 }
  0x34   : > { %269 = vrot.lane.b32.xlu0 %v172_v1, %s2195_s25  ;;  %275 = vrot.lane.b32.xlu1 %v172_v1, %s2196_s26  ;;  %s2472_s26 = scalar_lea.hbm %s2518_s3, %s2045_s17 }
  0x8a   : > { %v185_v2 = vpop.permute.xlu1 %184  ;;  %v175_v3 = vpop.permute.xlu0 %174 }
  0x8b   : > { %178 = vst.msk [vmem:[#allocation2] sm:$0xf] %vm177_vm0, %v175_v3  ;;  %vm238_vm0 = vcmask 318464   ;;  %v1935_v3 = vld [vmem:[%s2516_s1 + $0x10] sm:$0xff] }
  0x8e   : > { %v190_v4 = vpop.permute.xlu1 %189  ;;  %v180_v5 = vpop.permute.xlu0 %179 }
  0x8f   : > { %183 = vst.msk [vmem:[#allocation2] sm:$0xf] %vm182_vm1, %v180_v5  ;;  %vm241_vm1 = vcmask 708152  }
  0x90   : > { %188 = vst.msk [vmem:[#allocation2] sm:$0xf] %vm187_vm2, %v185_v2  ;;  %vm249_vm2 = vcmask 855752  }
  0x91   : > { %193 = vst.msk [vmem:[#allocation2] sm:$0xf] %vm192_vm3, %v190_v4  ;;  %vm265_vm3 = vcmask 1044456  }
  0x92   : > { %v195_v6 = vpop.permute.xlu1 %194  ;;  %v205_v7 = vpop.permute.xlu0 %204 }
  0x93   : > { %198 = vst.msk [vmem:[#allocation2] sm:$0xf] %vm197_vm4, %v195_v6  ;;  %v206_v8 = vrot.slane %v205_v7, 4  ;;  %vm266_vm4 = vcmask 105476  }
  0x95   : > { %v208_v11 = vsel %vm207_vm7, %v206_v8, %v205_v7  ;;  %vm257_vm7 = vcmask 1003352   ;;  %v1941_v8 = vld [vmem:[%s2516_s1 + $0x18] sm:$0xff] }
  0x96   : > { %v220_v9 = vpop.permute.xlu1 %219  ;;  %v200_v10 = vpop.permute.xlu0 %199 }
  0x97   : > { %v221_v12 = vrot.slane %v220_v9, 4  ;;  %203 = vst.msk [vmem:[#allocation2] sm:$0xf] %vm202_vm8, %v200_v10  ;;  %vm267_vm8 = vmor %vm266_vm4, %vm265_vm3  ;;  %vm1317_vm3 = vcmask 752640   ;;  %vm1490_vm4 = vcmask 744448  }
  0x98   : > { %213 = vst.msk [vmem:[#allocation2] sm:$0xff] %vm212_vm9, %v208_v11  ;;  %vm273_vm9 = vcmask 248952  }
  0x99   : > { %v223_v15 = vsel %vm222_vm10, %v220_v9, %v221_v12  ;;  %vm279_vm10 = vcmask 396552  }
  0x9a   : > { %v215_v13 = vpop.permute.xlu1 %214  ;;  %v228_v14 = vpop.permute.xlu0 %227 }
  0x9b   : > { %218 = vst.msk [vmem:[#allocation2 + $0x4] sm:$0xf] %vm217_vm11, %v215_v13  ;;  %v229_v16 = vrot.slane %v228_v14, 4  ;;  %vm2202_vm11 = vmmov 0  }
  0x9c   : > { %226 = vst.msk [vmem:[#allocation2 + $0x4] sm:$0xf] %vm225_vm12, %v223_v15  ;;  %2001 = vmatprep.mubr.msk.f32.mxu1 %vm2202_vm11, %v2180_v0  ;;  %vm300_vm12 = vcmask 1039360  }
  0x9d   : > { %v231_v17 = vsel %vm230_vm13, %v228_v14, %v229_v16  ;;  %vm308_vm13 = vcmask 1043456   ;;  %v1947_v14 = vld [vmem:[%s2516_s1 + $0x20] sm:$0xff] }
  0x9e   : > { %234 = vst.msk [vmem:[#allocation2 + $0x4] sm:$0xf] %vm233_vm14, %v231_v17  ;;  %v244_v18 = vpop.permute.xlu1 %243  ;;  %v236_v19 = vpop.permute.xlu0 %235  ;;  %vm304_vm14 = vcmask 31744  }
  0x9f   : > { %v245_v20 = vrot.slane %v244_v18, 4  ;;  %v237_v21 = vrot.slane %v236_v19, 4 }
  0xa1   : > { %v247_v22 = vsel %vm246_vm15, %v244_v18, %v245_v20  ;;  %v239_v23 = vsel %vm238_vm0, %v236_v19, %v237_v21  ;;  %vm625_vm15 = vcmask 1031168   ;;  %vm798_vm0 = vcmask 900096   ;;  %v1953_v20 = vld [vmem:[%s2516_s1 + $0x28] sm:$0xff] }
  0xa2   : > { %242 = vst.msk [vmem:[#allocation2 + $0x4] sm:$0xf] %vm241_vm1, %v239_v23  ;;  %v260_v24 = vpop.permute.xlu1 %259  ;;  %v252_v25 = vpop.permute.xlu0 %251  ;;  %vm971_vm1 = vcmask 891904  }
  0xa3   : > { %v261_v26 = vrot.slane %v260_v24, 4  ;;  %250 = vst.msk [vmem:[#allocation2 + $0x4] sm:$0xf] %vm249_vm2, %v247_v22  ;;  %v253_v27 = vrot.slane %v252_v25, 4  ;;  %vm1144_vm2 = vcmask 883712  }
  0xa5   : > { %v263_v28 = vsel %vm262_vm5, %v260_v24, %v261_v26  ;;  %v255_v29 = vsel %vm254_vm6, %v252_v25, %v253_v27  ;;  %v1959_v26 = vld [vmem:[%s2516_s1 + $0x30] sm:$0xff]  ;;  %vm1663_vm5 = vcmask 736256  }
  0xa6   : > { %258 = vst.msk [vmem:[#allocation2 + $0x4] sm:$0xf] %vm257_vm7, %v255_v29  ;;  %v270_v30 = vpop.permute.xlu0 %269  ;;  %v276_v31 = vpop.permute.xlu1 %275 }
  0xa7   : > { %268 = vst.msk [vmem:[#allocation2 + $0x4] sm:$0xff] %vm267_vm8, %v263_v28  ;;  %v271_v32 = vrot.slane %v270_v30, 4  ;;  %v277_v33 = vrot.slane %v276_v31, 4 }
  0xa9   : > { %274 = vst.msk [vmem:[#allocation2 + $0x8] sm:$0xf] %vm273_vm9, %v271_v32  ;;  %v1965_v32 = vld [vmem:[%s2516_s1 + $0x38] sm:$0xff] }
  0xaa   : > { %280 = vst.msk [vmem:[#allocation2 + $0x8] sm:$0xf] %vm279_vm10, %v277_v33 }
  0xae   : > { %v2286_v34 = vld [vmem:[#allocation2] sm:$0xff] }
  0xaf   : > { %292 = vrot.lane.b32.xlu0 %v2286_v34, %s2197_s27  ;;  %v290_v36 = vcombine.high %v2286_v34, %v2286_v34 }
  0xb1   : > { %v285_v35 = vld [vmem:[#allocation2 + $0x8] sm:$0xff] }
  0xb2   : > { %296 = vrot.lane.b32.xlu1 %v285_v35, %s2197_s27  ;;  %v291_v37 = vcombine.high %v285_v35, %v285_v35  ;;  %v282_v2 = vld [vmem:[#allocation2 + $0x8] sm:$0xf] }
  0xb3   : > { %617 = vrot.lane.b32.xlu0 %v2286_v34, %s2198_s28 }
  0xb6   : > { %621 = vrot.lane.b32.xlu1 %v285_v35, %s2198_s28 }
  0xb7   : > { %790 = vrot.lane.b32.xlu0 %v2286_v34, %s2199_s29 }
  0xba   : > { %794 = vrot.lane.b32.xlu1 %v285_v35, %s2199_s29 }
  0xbb   : > { %963 = vrot.lane.b32.xlu0 %v2286_v34, %s2200_s30 }
  0xbe   : > { %967 = vrot.lane.b32.xlu1 %v285_v35, %s2200_s30 }
  0xbf   : > { %1136 = vrot.lane.b32.xlu0 %v2286_v34, %s2201_s4 }
  0xc2   : > { %1140 = vrot.lane.b32.xlu1 %v285_v35, %s2201_s4 }
  0xc3   : > { %1309 = vrot.lane.b32.xlu0 %v2286_v34, %s2203_s5 }
  0xc6   : > { %1313 = vrot.lane.b32.xlu1 %v285_v35, %s2203_s5 }
  0xc7   : > { %294 = vrot.lane.b32.xlu0 %v290_v36, %s2197_s27 }
  0xca   : > { %1486 = vrot.lane.b32.xlu1 %v285_v35, %s2204_s6 }
  0xcb   : > { %1482 = vrot.lane.b32.xlu0 %v2286_v34, %s2204_s6 }
  0xce   : > { %298 = vrot.lane.b32.xlu1 %v291_v37, %s2197_s27  ;;  %s2118_s27 = scalar_lea.vmem %s2474_s20, 384 }
  0xcf   : > { %619 = vrot.lane.b32.xlu0 %v290_v36, %s2198_s28  ;;  %p2119_p11 = scmp.ne.s32.totalorder %s2474_s20, %s2118_s27 }
  0xd1   : > { %p2120_p12 = pnand %p2119_p11, %p2267_p5 }
  0xd2   : > { %1659 = vrot.lane.b32.xlu1 %v285_v35, %s2205_s7 }
  0xd3   : > { %792 = vrot.lane.b32.xlu0 %v290_v36, %s2199_s29  ;;  %p2121_p13 = pneg %p2120_p12 }
  0xd6   : > { %623 = vrot.lane.b32.xlu1 %v291_v37, %s2198_s28  ;;  %s2208_s28 = smov [#allocation3]  }
  0xd7   : > { %965 = vrot.lane.b32.xlu0 %v290_v36, %s2200_s30 }
  0xda   : > { %796 = vrot.lane.b32.xlu1 %v291_v37, %s2199_s29  ;;  %s2122_s29 = sshll.u32 %s2208_s28, 4  ;;  %s2123_s29 = int_to_ptr.vmem [resolvable:$false] %s2122_s29 }
  0xdb   : > { %1138 = vrot.lane.b32.xlu0 %v290_v36, %s2201_s4  ;;  %p2125_p0 = scmp.lt.s32.totalorder %s2474_s20, %s2123_s29 }
  0xde   : > { %969 = vrot.lane.b32.xlu1 %v291_v37, %s2200_s30  ;;  %s2124_s30 = scalar_lea.vmem %s2123_s29, 768 }
  0xdf   : > { %1311 = vrot.lane.b32.xlu0 %v290_v36, %s2203_s5  ;;  %p2126_p1 = scmp.lt.s32.totalorder %s2124_s30, %s2118_s27 }
  0xe1   : > { %p2127_p2 = por %p2126_p1, %p2125_p0 }
  0xe2   : > { %1142 = vrot.lane.b32.xlu1 %v291_v37, %s2201_s4 }
  0xe3   : > { %1484 = vrot.lane.b32.xlu0 %v290_v36, %s2204_s6  ;;  %p2128_p3 = pnand %p2127_p2, %p2121_p13 }
  0xe6   : > { %1315 = vrot.lane.b32.xlu1 %v291_v37, %s2203_s5 }
  0xe7   : > { %1657 = vrot.lane.b32.xlu0 %v290_v36, %s2205_s7 }
  0xea   : > { %1488 = vrot.lane.b32.xlu1 %v291_v37, %s2204_s6 }
  0xeb   : > { %1655 = vrot.lane.b32.xlu0 %v2286_v34, %s2205_s7 }
  0xee   : > { %1661 = vrot.lane.b32.xlu1 %v291_v37, %s2205_s7 }
  0xef   : > { %1822 = vperm.xlu0 %2113, %v171_v40  }
  0xf2   : > { %1832 = vperm.xlu1 %2114, %v171_v40   ;;  %v1971_v40 = vld [vmem:[%s2516_s1 + $0x40] sm:$0xff] }
  0xf3   : > { %2115 = vset.pattern.permute.xlu0 %v2207_v39 }
 0x121   : > { %v293_v41 = vpop.permute.xlu0 %292 }
 0x124   : > { %v297_v42 = vpop.permute.xlu1 %296 }
 0x125   : > { %v618_v43 = vpop.permute.xlu0 %617 }
 0x128   : > { %v622_v44 = vpop.permute.xlu1 %621 }
 0x129   : > { %v791_v45 = vpop.permute.xlu0 %790 }
 0x12c   : > { %v2303_v46 = vpop.permute.xlu1 %794 }
 0x12d   : > { %v964_v47 = vpop.permute.xlu0 %963 }
 0x130   : > { %v2305_v48 = vpop.permute.xlu1 %967 }
 0x131   : > { %v2307_v49 = vpop.permute.xlu0 %1136 }
 0x134   : > { %v2309_v50 = vpop.permute.xlu1 %1140 }
 0x135   : > { %v2311_v51 = vpop.permute.xlu0 %1309 }
 0x138   : > { %v2313_v52 = vpop.permute.xlu1 %1313 }
 0x139   : > { %v295_v53 = vpop.permute.xlu0 %294 }
 0x13a   : > { %v302_v54 = vsel %vm300_vm12, %v295_v53, %v297_v42  ;;  %v301_v55 = vsel %vm300_vm12, %v293_v41, %v295_v53 }
 0x13b   : > { %1925 = vmatprep.subr.msk.mxu0 %vm308_vm13, %v302_v54 }
 0x13c   : > { %v2321_v57 = vpop.permute.xlu1 %1486  ;;  %1926 = vmatpush1.msk.msra.mxu0 %vm308_vm13, %v301_v55 }
 0x13d   : > { %1927 = vmatmul.mubr.msk.f32.vlgmr.msra.gmra.mxu0 %vm304_vm14, %v1924_v56  ;;  %1930 = vmatprep.subr.msk.mxu0 %vm308_vm13, %v290_v36  ;;  %v2326_v58 = vpop.permute.xlu0 %1482 }
 0x13e   : > { %1931 = vmatpush1.msk.msra.mxu0 %vm308_vm13, %v2286_v34  ;;  %532 = vmatprep.mubr.f32.mxu0 %v2180_v0 }
 0x140   : > { %v299_v60 = vpop.permute.xlu1 %298 }
 0x141   : > { %1932 = vmatmul.mubr.msk.f32.vlgmr.msra.gmra.mxu0 %vm304_vm14, %v283_v59  ;;  %v620_v61 = vpop.permute.xlu0 %619  ;;  %v303_v62 = vsel %vm300_vm12, %v297_v42, %v299_v60 }
 0x142   : > { %v626_v63 = vsel %vm625_vm15, %v618_v43, %v620_v61  ;;  %v627_v1 = vsel %vm625_vm15, %v620_v61, %v622_v44  ;;  %2000 = vmatpush3.msk.msra.mxu1 %vm308_vm13, %v303_v62  ;;  %702 = vmatprep.mubr.f32.mxu0 %v2180_v0 }
 0x143   : > { %2002 = vmatmul.mubr.msk.f32.vlgmr.msra.gmra.mxu1 %vm304_vm14, %v1924_v56  ;;  %2004 = vmatprep.subr.mxu1 %v2180_v0 }
 0x144   : > { %1936 = vmatprep.subr.msk.mxu0 %vm308_vm13, %v627_v1  ;;  %v2346_v4 = vpop.permute.xlu1 %1659  ;;  %2005 = vmatpush3.msk.msra.mxu1 %vm308_vm13, %v282_v2 }
 0x145   : > { %1937 = vmatpush1.msk.msra.mxu0 %vm308_vm13, %v626_v63  ;;  %v793_v5 = vpop.permute.xlu0 %792  ;;  %2006 = vmatprep.mubr.msk.f32.mxu1 %vm2202_vm11, %v2180_v0 }
 0x146   : > { %1938 = vmatmul.mubr.msk.f32.vlgmr.msra.gmra.mxu0 %vm304_vm14, %v1935_v3  ;;  %v799_v6 = vsel %vm798_vm0, %v791_v45, %v793_v5  ;;  %v800_v7 = vsel %vm798_vm0, %v793_v5, %v2303_v46  ;;  %2009 = vmatprep.subr.mxu1 %v2180_v0 }
 0x147   : > { %2007 = vmatmul.mubr.msk.f32.vlgmr.msra.gmra.mxu1 %vm304_vm14, %v283_v59  ;;  %1942 = vmatprep.subr.msk.mxu0 %vm308_vm13, %v800_v7 }
 0x148   : > { %v624_v9 = vpop.permute.xlu1 %623  ;;  %1943 = vmatpush1.msk.msra.mxu0 %vm308_vm13, %v799_v6  ;;  %875 = vmatprep.mubr.f32.mxu0 %v2180_v0 }
 0x149   : > { %v628_v10 = vsel %vm625_vm15, %v622_v44, %v624_v9  ;;  %v966_v11 = vpop.permute.xlu0 %965  ;;  %2011 = vmatprep.mubr.msk.f32.mxu1 %vm2202_vm11, %v2180_v0 }
 0x14a   : > { %1944 = vmatmul.mubr.msk.f32.vlgmr.msra.gmra.mxu0 %vm304_vm14, %v1941_v8  ;;  %v972_v12 = vsel %vm971_vm1, %v964_v47, %v966_v11  ;;  %v973_v13 = vsel %vm971_vm1, %v966_v11, %v2305_v48  ;;  %2010 = vmatpush3.msk.msra.mxu1 %vm308_vm13, %v628_v10 }
 0x14b   : > { %2012 = vmatmul.mubr.msk.f32.vlgmr.msra.gmra.mxu1 %vm304_vm14, %v1935_v3  ;;  %1948 = vmatprep.subr.msk.mxu0 %vm308_vm13, %v973_v13 }
 0x14c   : > { %v797_v15 = vpop.permute.xlu1 %796  ;;  %1949 = vmatpush1.msk.msra.mxu0 %vm308_vm13, %v972_v12  ;;  %1048 = vmatprep.mubr.f32.mxu0 %v2180_v0 }
 0x14d   : > { %v801_v16 = vsel %vm798_vm0, %v2303_v46, %v797_v15  ;;  %2014 = vmatprep.subr.mxu1 %v2180_v0  ;;  %v1139_v17 = vpop.permute.xlu0 %1138  ;;  %2016 = vmatprep.mubr.msk.f32.mxu1 %vm2202_vm11, %v2180_v0 }
 0x14e   : > { %1950 = vmatmul.mubr.msk.f32.vlgmr.msra.gmra.mxu0 %vm304_vm14, %v1947_v14  ;;  %v1145_v18 = vsel %vm1144_vm2, %v2307_v49, %v1139_v17  ;;  %v1146_v19 = vsel %vm1144_vm2, %v1139_v17, %v2309_v50  ;;  %2015 = vmatpush3.msk.msra.mxu1 %vm308_vm13, %v801_v16 }
 0x14f   : > { %2017 = vmatmul.mubr.msk.f32.vlgmr.msra.gmra.mxu1 %vm304_vm14, %v1941_v8  ;;  %1954 = vmatprep.subr.msk.mxu0 %vm308_vm13, %v1146_v19 }
 0x150   : > { %v970_v21 = vpop.permute.xlu1 %969  ;;  %1955 = vmatpush1.msk.msra.mxu0 %vm308_vm13, %v1145_v18  ;;  %1221 = vmatprep.mubr.f32.mxu0 %v2180_v0 }
 0x151   : > { %v974_v22 = vsel %vm971_vm1, %v2305_v48, %v970_v21  ;;  %2019 = vmatprep.subr.mxu1 %v2180_v0  ;;  %v1312_v23 = vpop.permute.xlu0 %1311  ;;  %2021 = vmatprep.mubr.msk.f32.mxu1 %vm2202_vm11, %v2180_v0 }
 0x152   : > { %1956 = vmatmul.mubr.msk.f32.vlgmr.msra.gmra.mxu0 %vm304_vm14, %v1953_v20  ;;  %v1318_v24 = vsel %vm1317_vm3, %v2311_v51, %v1312_v23  ;;  %v1319_v25 = vsel %vm1317_vm3, %v1312_v23, %v2313_v52  ;;  %2020 = vmatpush3.msk.msra.mxu1 %vm308_vm13, %v974_v22 }
 0x153   : > { %2022 = vmatmul.mubr.msk.f32.vlgmr.msra.gmra.mxu1 %vm304_vm14, %v1947_v14  ;;  %1960 = vmatprep.subr.msk.mxu0 %vm308_vm13, %v1319_v25 }
 0x154   : > { %v1143_v27 = vpop.permute.xlu1 %1142  ;;  %1961 = vmatpush1.msk.msra.mxu0 %vm308_vm13, %v1318_v24  ;;  %1394 = vmatprep.mubr.f32.mxu0 %v2180_v0 }
 0x155   : > { %v1147_v28 = vsel %vm1144_vm2, %v2309_v50, %v1143_v27  ;;  %2024 = vmatprep.subr.mxu1 %v2180_v0  ;;  %v1485_v29 = vpop.permute.xlu0 %1484  ;;  %2026 = vmatprep.mubr.msk.f32.mxu1 %vm2202_vm11, %v2180_v0 }
 0x156   : > { %1962 = vmatmul.mubr.msk.f32.vlgmr.msra.gmra.mxu0 %vm304_vm14, %v1959_v26  ;;  %v1491_v30 = vsel %vm1490_vm4, %v2326_v58, %v1485_v29  ;;  %v1492_v31 = vsel %vm1490_vm4, %v1485_v29, %v2321_v57  ;;  %2025 = vmatpush3.msk.msra.mxu1 %vm308_vm13, %v1147_v28 }
 0x157   : > { %2027 = vmatmul.mubr.msk.f32.vlgmr.msra.gmra.mxu1 %vm304_vm14, %v1953_v20  ;;  %1966 = vmatprep.subr.msk.mxu0 %vm308_vm13, %v1492_v31 }
 0x158   : > { %v1316_v33 = vpop.permute.xlu1 %1315  ;;  %1967 = vmatpush1.msk.msra.mxu0 %vm308_vm13, %v1491_v30  ;;  %1567 = vmatprep.mubr.f32.mxu0 %v2180_v0 }
 0x159   : > { %v1320_v34 = vsel %vm1317_vm3, %v2313_v52, %v1316_v33  ;;  %2029 = vmatprep.subr.mxu1 %v2180_v0  ;;  %v1658_v35 = vpop.permute.xlu0 %1657  ;;  %2031 = vmatprep.mubr.msk.f32.mxu1 %vm2202_vm11, %v2180_v0 }
 0x15a   : > { %1968 = vmatmul.mubr.msk.f32.vlgmr.msra.gmra.mxu0 %vm304_vm14, %v1965_v32  ;;  %v1665_v36 = vsel %vm1663_vm5, %v1658_v35, %v2346_v4  ;;  %2030 = vmatpush3.msk.msra.mxu1 %vm308_vm13, %v1320_v34 }
 0x15b   : > { %2032 = vmatmul.mubr.msk.f32.vlgmr.msra.gmra.mxu1 %vm304_vm14, %v1959_v26  ;;  %1972 = vmatprep.subr.msk.mxu0 %vm308_vm13, %v1665_v36 }
 0x15c   : > { %v1489_v37 = vpop.permute.xlu1 %1488  ;;  %2034 = vmatprep.subr.mxu1 %v2180_v0  ;;  %2036 = vmatprep.mubr.msk.f32.mxu1 %vm2202_vm11, %v2180_v0 }
 0x15d   : > { %v1493_v38 = vsel %vm1490_vm4, %v2321_v57, %v1489_v37  ;;  %v1656_v39 = vpop.permute.xlu0 %1655  ;;  %1740 = vmatprep.mubr.f32.mxu0 %v2180_v0 }
 0x15e   : > { %v1664_v41 = vsel %vm1663_vm5, %v1656_v39, %v1658_v35  ;;  %2035 = vmatpush3.msk.msra.mxu1 %vm308_vm13, %v1493_v38 }
 0x15f   : > { %2037 = vmatmul.mubr.msk.f32.vlgmr.msra.gmra.mxu1 %vm304_vm14, %v1965_v32  ;;  %1973 = vmatpush1.msk.msra.mxu0 %vm308_vm13, %v1664_v41 }
 0x160   : > { %v1662_v42 = vpop.permute.xlu1 %1661  ;;  %1974 = vmatmul.mubr.msk.f32.vlgmr.msra.gmra.mxu0 %vm304_vm14, %v1971_v40  ;;  %2039 = vmatprep.subr.mxu1 %v2180_v0 }
 0x161   : > { %v1666_v43 = vsel %vm1663_vm5, %v2346_v4, %v1662_v42  ;;  %2041 = vmatprep.mubr.msk.f32.mxu1 %vm2202_vm11, %v2180_v0 }
 0x162   : > { %2040 = vmatpush3.msk.msra.mxu1 %vm308_vm13, %v1666_v43 }
 0x163   : > { %2042 = vmatmul.mubr.msk.f32.vlgmr.msra.gmra.mxu1 %vm304_vm14, %v1971_v40 }
 0x16a   : > { %v1823_v31 = vpop.permute.xlu0 %1822 }
 0x16d   : > { %v1833_v37 = vpop.permute.xlu1 %1832 }
 0x1fd   : > { %v381_v44 = vpop.f32.mrf.mxu0 }
 0x1ff   : > { %v383_v45 = vpop.f32.mrf.mxu0 }
 0x201   : > { %v534_v46 = vpop.f32.mrf.mxu0 }
 0x202   : > { %v535_v62 = vadd.f32 %v534_v46, %v381_v44 }
 0x203   : > { %v452_v47 = vpop.f32.mrf.mxu1  ;;  %v536_v48 = vpop.f32.mrf.mxu0 }
 0x204   : > { %v537_v2 = vadd.f32 %v536_v48, %v383_v45 }
 0x205   : > { %v2003_v49 = vpop.f32.mrf.mxu1 }
 0x206   : > { %v704_v50 = vpop.f32.mrf.mxu0 }
 0x207   : > { %v605_v51 = vpop.f32.mrf.mxu1  ;;  %v779_v3 = vadd.f32 %v704_v50, %v535_v62 }
 0x208   : > { %v706_v52 = vpop.f32.mrf.mxu0  ;;  %v606_v5 = vadd.f32 %v605_v51, %v452_v47 }
 0x209   : > { %v2008_v53 = vpop.f32.mrf.mxu1  ;;  %v780_v7 = vadd.f32 %v706_v52, %v537_v2 }
 0x20a   : > { %v877_v54 = vpop.f32.mrf.mxu0 }
 0x20b   : > { %v775_v55 = vpop.f32.mrf.mxu1  ;;  %v952_v8 = vadd.f32 %v877_v54, %v779_v3 }
 0x20c   : > { %v879_v56 = vpop.f32.mrf.mxu0  ;;  %v781_v10 = vadd.f32 %v775_v55, %v606_v5 }
 0x20d   : > { %v2013_v57 = vpop.f32.mrf.mxu1  ;;  %v953_v12 = vadd.f32 %v879_v56, %v780_v7 }
 0x20e   : > { %v1050_v58 = vpop.f32.mrf.mxu0 }
 0x20f   : > { %v948_v0 = vpop.f32.mrf.mxu1  ;;  %v1125_v13 = vadd.f32 %v1050_v58, %v952_v8 }
 0x210   : > { %v1052_v59 = vpop.f32.mrf.mxu0  ;;  %v954_v15 = vadd.f32 %v948_v0, %v781_v10 }
 0x211   : > { %v2018_v60 = vpop.f32.mrf.mxu1  ;;  %v1126_v17 = vadd.f32 %v1052_v59, %v953_v12 }
 0x212   : > { %v1223_v61 = vpop.f32.mrf.mxu0 }
 0x213   : > { %v1121_v63 = vpop.f32.mrf.mxu1  ;;  %v1298_v18 = vadd.f32 %v1223_v61, %v1125_v13 }
 0x214   : > { %v1225_v1 = vpop.f32.mrf.mxu0  ;;  %v1127_v20 = vadd.f32 %v1121_v63, %v954_v15 }
 0x215   : > { %v2023_v4 = vpop.f32.mrf.mxu1  ;;  %v1299_v21 = vadd.f32 %v1225_v1, %v1126_v17 }
 0x216   : > { %v1396_v6 = vpop.f32.mrf.mxu0 }
 0x217   : > { %v1294_v9 = vpop.f32.mrf.mxu1  ;;  %v1471_v22 = vadd.f32 %v1396_v6, %v1298_v18 }
 0x218   : > { %v1398_v11 = vpop.f32.mrf.mxu0  ;;  %v1300_v24 = vadd.f32 %v1294_v9, %v1127_v20 }
 0x219   : > { %v2028_v14 = vpop.f32.mrf.mxu1  ;;  %v1472_v26 = vadd.f32 %v1398_v11, %v1299_v21 }
 0x21a   : > { %v1569_v16 = vpop.f32.mrf.mxu0 }
 0x21b   : > { %v1467_v19 = vpop.f32.mrf.mxu1  ;;  %v1644_v27 = vadd.f32 %v1569_v16, %v1471_v22 }
 0x21c   : > { %v1571_v25 = vpop.f32.mrf.mxu0  ;;  %v1473_v29 = vadd.f32 %v1467_v19, %v1300_v24 }
 0x21d   : > { %v2033_v23 = vpop.f32.mrf.mxu1  ;;  %v1645_v32 = vadd.f32 %v1571_v25, %v1472_v26 }
 0x21f   : > { %v1640_v28 = vpop.f32.mrf.mxu1 }
 0x220   : > { %v1742_v30 = vpop.f32.mrf.mxu0  ;;  %v1646_v35 = vadd.f32 %v1640_v28, %v1473_v29 }
 0x221   : > { %v1817_v33 = vadd.f32 %v1742_v30, %v1644_v27  ;;  %v2038_v34 = vpop.f32.mrf.mxu1 }
 0x222   : > { %v1744_v36 = vpop.f32.mrf.mxu0 }
 0x223   : > { %v1818_v38 = vadd.f32 %v1744_v36, %v1645_v32  ;;  %v1825_v39 = vadd.f32 %v1823_v31, %v1817_v33  ;;  %v1813_v40 = vpop.f32.mrf.mxu1 }
 0x224   : > { %v1819_v41 = vadd.f32 %v1813_v40, %v1646_v35 }
 0x225   : > { %v1826_v42 = vadd.f32 %v1823_v31, %v1818_v38  ;;  %vm1828_vm6 = vcmp.gt.f32.partialorder %v1825_v39, 0.0  ;;  %v1835_v43 = vmul.f32 %v1833_v37, %v1825_v39  ;;  %v2043_v44 = vpop.f32.mrf.mxu1 }
 0x226   : > { %v1827_v45 = vadd.f32 %v1823_v31, %v1819_v41 }
 0x227   : > { %vm1829_vm7 = vcmp.gt.f32.partialorder %v1826_v42, 0.0  ;;  %v1836_v46 = vmul.f32 %v1833_v37, %v1826_v42  ;;  %v1838_v47 = vsel %vm1828_vm6, %v1825_v39, %v1835_v43 }
 0x228   : > { %vm1830_vm8 = vcmp.gt.f32.partialorder %v1827_v45, 0.0  ;;  %v1837_v48 = vmul.f32 %v1833_v37, %v1827_v45  ;;  %1841 = vst [vmem:[%s163_s19] sm:$0xff] %v1838_v47 }
 0x229   : > { %v1839_v49 = vsel %vm1829_vm7, %v1826_v42, %v1836_v46 }
 0x22a   : > { %v1840_v50 = vsel %vm1830_vm8, %v1827_v45, %v1837_v48  ;;  %1842 = vst [vmem:[%s163_s19 + $0x8] sm:$0xff] %v1839_v49 }
 0x22b   : > { %1843 = vst [vmem:[%s163_s19 + $0x10] sm:$0xff] %v1840_v50 }
 0x22c   : > { %2131 = shalt.err (!%p2128_p3)
}
 0x22d   : > { %s2132_s4 = scalar_lea.hbm %s2472_s26, 384  ;;  %s2136_s7 = scalar_lea.hbm %s2518_s3, 768 }
 0x22e   : > { %p2133_p4 = scmp.ne.s32.totalorder %s2472_s26, %s2132_s4  ;;  %p2137_p9 = scmp.lt.s32.totalorder %s2472_s26, %s2518_s3 }
 0x22f   : > { %p2138_p10 = scmp.lt.s32.totalorder %s2136_s7, %s2132_s4 }
 0x230   : > { %p2134_p7 = pnand %p2133_p4, %p2267_p5 }
 0x231   : > { %p2139_p11 = por %p2138_p10, %p2137_p9 }
 0x232   : > { %p2135_p8 = pneg %p2134_p7 }
 0x234   : > { %p2140_p12 = pnand %p2139_p11, %p2135_p8 }
 0x236   : > { %2143 = shalt.err (!%p2140_p12)
}
 0x237   : > { %2046 = dma.vmem_to_hbm [thread:$0]  (%p2267_p5), %s2474_s20, 384, %s2472_s26, %s1845_s16  }
 0x238 PF: > { %p2052_p13 = scmp.ge.s32.totalorder %s2178_s15, 2  ;;  %s1871_s10 = sand.u32 1, %s2166_s12  }
 0x239   : > { %s1872_s11 = scalar_lea.sflag [#allocation4], %s1871_s10 }
 0x23a   : > { %p2049_p0 = pnand %p2052_p13, %p2271_p6 }
 0x23c   : > { %p2050_p1 = pneg %p2049_p0 }
 0x23e   : > { %2161 = dma.done.wait (%p2050_p1), %s1872_s11, 384  }
 0x23f   : > { %2163 = vsyncadd (%p2050_p1), %s1872_s11, 4294966912  ;;  %p13_p2 = scmp.ge.s32.totalorder %s2254_s18, 4   ;;  %s2521_s12 = smov %s2170_s13 }
 0x240   : > { %s2522_s13 = smov %s2174_s14  ;;  %s2523_s14 = smov %s2265_s21 }
 0x241   : > { %s2524_s15 = smov %s2254_s18  ;;  %15 = sbr.rel (!%p13_p2) target bundleno = 3 (0x3), region = 75 }
 0x246   :  { %1877 = vsyncpa [#allocation4], 1 }
 0x247   :  { %1879 = vsyncpa [#allocation4 + $0x1], 1 }

</bundles_post_ra>
